<compile_context>
chip_gen: v6e
topology: v6e:2x2x1
jax: 0.10.0
libtpu: 0.0.40
codegen_flags: <defaults>
</compile_context>

<pallas_src>
import functools

import jax
import jax.numpy as jnp
from jax import lax
from jax.experimental import pallas as pl
from jax.experimental.pallas import tpu as pltpu


def _round_up(x, m):
    return (x + m - 1) // m * m


def _vmem_capacity_bytes(default=64 * 1024 * 1024):
    """Best-effort VMEM capacity query; conservative fallback (v7x-sized)."""
    try:
        info = pltpu.get_tpu_info()
        cap = getattr(info, "vmem_capacity_bytes", None)
        if cap:
            return int(cap)
    except Exception:
        pass
    return default


def _label_smoothing_kernel(tgt_ref, pred_ref, out_ref, *,
                            confidence, smooth_val, block_n, n_valid, mask_tail):
    """One (block_n, C) tile of logits -> lane-dense per-block partial loss sum."""
    i = pl.program_id(0)

    x = pred_ref[...].astype(jnp.float32)                              # (block_n, C)

    # Numerically stable log-softmax row statistics (no full logp tile).
    m = jnp.max(x, axis=-1, keepdims=True)                             # (block_n, 1)
    xm = x - m                                                         # shifted logits
    lse = jnp.log(jnp.sum(jnp.exp(xm), axis=-1, keepdims=True))        # (block_n, 1)

    # true_dist rows sum to 1, so
    #   row_loss = sum_c(true_dist_c * (lse - xm_c))
    #            = lse - [conf * xm[tgt] + sv * sum_{c != tgt} xm_c]
    # -> one weighted cross-lane reduction instead of separate sum(x)/x[tgt] passes.
    tgt = tgt_ref[...]                                                 # (block_n, 1) i32
    class_ids = lax.broadcasted_iota(jnp.int32, x.shape, 1)            # (block_n, C)
    weighted = jnp.where(class_ids == tgt, confidence * xm, smooth_val * xm)
    row_loss = lse - jnp.sum(weighted, axis=-1, keepdims=True)         # (block_n, 1)

    if mask_tail:  # compile-time flag: emitted only when N % block_n != 0
        row_ids = i * block_n + lax.broadcasted_iota(jnp.int32, (block_n, 1), 0)
        row_loss = jnp.where(row_ids < n_valid, row_loss, 0.0)         # select: no NaN leak

    out_ref[...] = jnp.broadcast_to(jnp.sum(row_loss), (1, 1, 128))


def label_smoothing_loss(pred, target, *, classes, smoothing=0.0, block_n=None):
    """pred: (N, C) float, target: (N,) int -> scalar mean label-smoothed loss."""
    N, C = pred.shape
    assert C == classes

    confidence = 1.0 - smoothing
    smooth_val = smoothing / (classes - 1) if classes > 1 else 0.0

    itemsize = jnp.dtype(pred.dtype).itemsize
    vmem_cap = _vmem_capacity_bytes()

    # Per-row VMEM cost: double-buffered streamed logits (native dtype),
    # ~3 live f32 working tiles in the kernel body, lane-padded (x2) targets.
    per_row_bytes = 2 * C * itemsize + 3 * C * 4 + 2 * 128 * 4
    if block_n is None:
        budget = max(2 << 20, int(vmem_cap * 0.4))
        block_n = (budget // per_row_bytes) // 8 * 8
        block_n = max(8, min(2048, block_n))
    block_n = max(8, (block_n // 8) * 8)
    block_n = min(block_n, _round_up(N, 8))

    num_blocks = pl.cdiv(N, block_n)
    mask_tail = (N % block_n) != 0

    target2d = target.astype(jnp.int32).reshape(N, 1)

    kernel = functools.partial(
        _label_smoothing_kernel,
        confidence=float(confidence),
        smooth_val=float(smooth_val),
        block_n=block_n,
        n_valid=N,
        mask_tail=mask_tail,
    )

    vmem_est = per_row_bytes * block_n + (4 << 20)
    vmem_limit = int(min(max(vmem_est, 16 << 20), vmem_cap * 3 // 4))

    cost = pl.CostEstimate(
        flops=int(6 * N * C),
        transcendentals=int(N * C),
        bytes_accessed=int(N * C * itemsize + N * 4 + num_blocks * 512),
    )

    partials = pl.pallas_call(
        kernel,
        out_shape=jax.ShapeDtypeStruct((num_blocks, 1, 128), jnp.float32),
        grid_spec=pltpu.PrefetchScalarGridSpec(
            num_scalar_prefetch=0,
            grid=(num_blocks,),
            in_specs=[
                # targets: streamed, block_n rows per step (O(block_n) VMEM)
                pl.BlockSpec((block_n, 1), lambda i: (i, 0)),
                # logits: streamed, block_n rows x full C per step
                pl.BlockSpec((block_n, C), lambda i: (i, 0)),
            ],
            out_specs=pl.BlockSpec((1, 1, 128), lambda i: (i, 0, 0)),
        ),
        compiler_params=pltpu.CompilerParams(
            dimension_semantics=("parallel",),   # disjoint per-block outputs
            vmem_limit_bytes=vmem_limit,
        ),
        cost_estimate=cost,
    )(target2d, pred)

    # Final reduction + mean over the *valid* batch rows, done in the wrapper.
    return jnp.sum(partials[:, 0, 0]) / jnp.float32(N)


def _reference_loss(pred, target, classes, smoothing):
    """Pure-JAX reference mirroring the PyTorch module."""
    logp = jax.nn.log_softmax(pred.astype(jnp.float32), axis=-1)
    smooth_val = smoothing / (classes - 1)
    onehot = jax.nn.one_hot(target, classes, dtype=jnp.float32)
    true_dist = onehot * (1.0 - smoothing) + (1.0 - onehot) * smooth_val
    return jnp.mean(jnp.sum(-true_dist * logp, axis=-1))


if __name__ == "__main__":
    key = jax.random.PRNGKey(0)
    k1, k2, k3, k4, k5, k6 = jax.random.split(key, 6)
    smoothing = 0.1

    # 1) Small demo shape consistent with the module: (batch, classes) logits.
    N, C = 16, 32
    pred = jax.random.normal(k1, (N, C), dtype=jnp.float32)
    target = jax.random.randint(k2, (N,), 0, C, dtype=jnp.int32)
    loss = jax.block_until_ready(
        label_smoothing_loss(pred, target, classes=C, smoothing=smoothing))
    ref = jax.block_until_ready(_reference_loss(pred, target, C, smoothing))
    assert jnp.allclose(loss, ref, rtol=1e-5, atol=1e-5), (loss, ref)

    # 2) Multiple grid blocks + ragged batch (no host-side padding, tail select).
    N2, C2 = 300, 160
    pred2 = jax.random.normal(k3, (N2, C2), dtype=jnp.float32)
    target2 = jax.random.randint(k4, (N2,), 0, C2, dtype=jnp.int32)
    loss2 = jax.block_until_ready(
        label_smoothing_loss(pred2, target2, classes=C2,
                             smoothing=smoothing, block_n=64))
    ref2 = jax.block_until_ready(_reference_loss(pred2, target2, C2, smoothing))
    assert jnp.allclose(loss2, ref2, rtol=1e-5, atol=1e-5), (loss2, ref2)

    # 3) bf16 logits streamed from HBM (kernel computes in f32), auto block_n.
    N3, C3 = 200, 96
    pred3 = jax.random.normal(k5, (N3, C3), dtype=jnp.float32).astype(jnp.bfloat16)
    target3 = jax.random.randint(k6, (N3,), 0, C3, dtype=jnp.int32)
    loss3 = jax.block_until_ready(
        label_smoothing_loss(pred3, target3, classes=C3, smoothing=smoothing))
    ref3 = jax.block_until_ready(
        _reference_loss(pred3.astype(jnp.float32), target3, C3, smoothing))
    assert jnp.allclose(loss3, ref3, rtol=1e-5, atol=1e-5), (loss3, ref3)

    print("KERNEL_OK")
</pallas_src>

<mosaic_0001>
module attributes {stable_mosaic.version = 11 : i64} {
  func.func @_label_smoothing_kernel(%arg0: i32, %arg1: memref<16x1xi32, #tpu.memory_space<vmem>>, %arg2: memref<16x32xf32, #tpu.memory_space<vmem>>, %arg3: memref<1x1x128xf32, #tpu.memory_space<vmem>>) attributes {dimension_semantics = [#tpu.dimension_semantics<parallel>], iteration_bounds = array<i64: 1>, scalar_prefetch = 0 : i64, scratch_operands = 0 : i64, tpu.core_type = #tpu.core_type<tc>, window_params = [{transform_indices = @transform_0, window_bounds = array<i64: 16, 1>}, {transform_indices = @transform_1, window_bounds = array<i64: 16, 32>}, {transform_indices = @transform_2, window_bounds = array<i64: 1, 1, 128>}]} {
    %c0 = arith.constant 0 : index
    %c0_0 = arith.constant 0 : index
    %0 = vector.load %arg2[%c0, %c0_0] : memref<16x32xf32, #tpu.memory_space<vmem>>, vector<16x32xf32>
    %cst = arith.constant dense<0xFF800000> : vector<16xf32>
    %1 = vector.multi_reduction <maximumf>, %0, %cst [1] : vector<16x32xf32> to vector<16xf32>
    %2 = vector.shape_cast %1 : vector<16xf32> to vector<16x1xf32>
    %3 = vector.broadcast %2 : vector<16x1xf32> to vector<16x32xf32>
    %4 = arith.subf %0, %3 : vector<16x32xf32>
    %5 = math.exp %4 : vector<16x32xf32>
    %cst_1 = arith.constant dense<0.000000e+00> : vector<16xf32>
    %6 = vector.multi_reduction <add>, %5, %cst_1 [1] : vector<16x32xf32> to vector<16xf32>
    %7 = vector.shape_cast %6 : vector<16xf32> to vector<16x1xf32>
    %8 = math.log %7 : vector<16x1xf32>
    %c0_2 = arith.constant 0 : index
    %c0_3 = arith.constant 0 : index
    %9 = vector.load %arg1[%c0_2, %c0_3] : memref<16x1xi32, #tpu.memory_space<vmem>>, vector<16x1xi32>
    %10 = tpu.iota {dimensions = array<i32: 1>} : vector<16x32xi32>
    %11 = vector.broadcast %9 : vector<16x1xi32> to vector<16x32xi32>
    %12 = arith.cmpi eq, %10, %11 : vector<16x32xi32>
    %cst_4 = arith.constant 0.899999976 : f32
    %13 = vector.broadcast %cst_4 : f32 to vector<16x32xf32>
    %14 = arith.mulf %13, %4 : vector<16x32xf32>
    %cst_5 = arith.constant 0.0032258064 : f32
    %15 = vector.broadcast %cst_5 : f32 to vector<16x32xf32>
    %16 = arith.mulf %15, %4 : vector<16x32xf32>
    %17 = arith.select %12, %14, %16 : vector<16x32xi1>, vector<16x32xf32>
    %cst_6 = arith.constant dense<0.000000e+00> : vector<16xf32>
    %18 = vector.multi_reduction <add>, %17, %cst_6 [1] : vector<16x32xf32> to vector<16xf32>
    %19 = vector.shape_cast %18 : vector<16xf32> to vector<16x1xf32>
    %20 = arith.subf %8, %19 : vector<16x1xf32>
    %21 = vector.shape_cast %20 : vector<16x1xf32> to vector<1x16x1xf32>
    %cst_7 = arith.constant dense<0.000000e+00> : vector<1xf32>
    %22 = vector.multi_reduction <add>, %21, %cst_7 [1, 2] : vector<1x16x1xf32> to vector<1xf32>
    %23 = vector.shape_cast %22 : vector<1xf32> to vector<1x1x1xf32>
    %24 = vector.extract %23[0, 0, 0] : f32 from vector<1x1x1xf32>
    %25 = vector.broadcast %24 : f32 to vector<1x1x128xf32>
    %c0_8 = arith.constant 0 : index
    %c0_9 = arith.constant 0 : index
    %c0_10 = arith.constant 0 : index
    %26 = vector.load %arg3[%c0_8, %c0_9, %c0_10] : memref<1x1x128xf32, #tpu.memory_space<vmem>>, vector<1x1x128xf32>
    tpu.vector_store %arg3[%c0_8, %c0_9, %c0_10], %25 {strides = array<i32>} : memref<1x1x128xf32, #tpu.memory_space<vmem>>, vector<1x1x128xf32>,
    return
  }
  func.func @transform_0(%arg0: i32) -> (i32, i32) {
    %c0_i32 = arith.constant 0 : i32
    %c0_i32_0 = arith.constant 0 : i32
    return %arg0, %c0_i32 : i32, i32
  }
  func.func @transform_1(%arg0: i32) -> (i32, i32) {
    %c0_i32 = arith.constant 0 : i32
    %c0_i32_0 = arith.constant 0 : i32
    return %arg0, %c0_i32 : i32, i32
  }
  func.func @transform_2(%arg0: i32) -> (i32, i32, i32) {
    %c0_i32 = arith.constant 0 : i32
    %c0_i32_0 = arith.constant 0 : i32
    %c0_i32_1 = arith.constant 0 : i32
    return %arg0, %c0_i32, %c0_i32_0 : i32, i32, i32
  }
}

</mosaic_0001>

<bundles_post_ra>
// kernel: tpu_custom_call.1
= control target key start
LH: loop header
LB: loop body
LE: loop exit
PB: predicated region body
PF: predicated region fallthrough
CT: control target
= control target key end

     0   :  { %vm14_vm0 = vcmask 261120   ;;  %v128_v4 = vmov 0   ;;  %s166_s0 = inlined_call_operand.vmem [shape: s32[16,1], index: 0, kind: input, shape index: {}]   ;;  %s167_s1 = inlined_call_operand.vmem [shape: f32[16,32], index: 1, kind: input, shape index: {}]   ;;  %s168_s2 = inlined_call_operand.hbm [shape: f32[1,1,128], index: 2, kind: output, shape index: {}]  }
   0x1   :  { %v12_v0 = vld [vmem:[%s167_s1] sm:$0xff]  ;;  %v13_v1 = vld [vmem:[%s167_s1 + $0x8] sm:$0xff]  ;;  %96 = vset.pattern.permute.xlu1 %v128_v4  ;;  %97 = vset.pattern.permute.xlu0 %v128_v4 }
   0x2   :  { %v37_v2 = vld [vmem:[%s166_s0] sm:$0xff]  ;;  %v15_v3 = vsel %vm14_vm0, %v12_v0, -inf }
   0x3   :  { %7 = vsyncpa [#allocation3], 0  ;;  %16 = vmax.xlane.f32.xlu0 %v15_v3  ;;  %42 = vperm.xlu1 %96, %v37_v2   ;;  %v18_v5 = vsel %vm14_vm0, %v13_v1, -inf  ;;  %v38_v6 = vld [vmem:[%s166_s0 + $0x8] sm:$0xff]  ;;  %v39_v13 = vlaneseq  ;;  %vm63_vm3 = vcmask 7168   ;;  %s129_s0 = smov [#allocation2]  }
   0x4   :  { %s84_s1 = sshll.u32 %s129_s0, 4  ;;  %s85_s1 = int_to_ptr.vmem [resolvable:$true] %s84_s1 }
   0x5   :  { %v40_v15 = vand.u32 127, %v39_v13  ;;  %s106_s18 = scalar_lea.vmem %s85_s1, 16  ;;  %s110_s19 = scalar_lea.vmem %s85_s1, 32 }
   0x6   :  { %p107_p0 = scmp.ne.s32.totalorder %s85_s1, %s106_s18  ;;  %p111_p1 = scmp.lt.s32.totalorder %s85_s1, %s85_s1 }
   0x7   :  { %19 = vmax.xlane.f32.xlu0 %v18_v5  ;;  %45 = vperm.xlu1 %96, %v38_v6   ;;  %p112_p2 = scmp.lt.s32.totalorder %s110_s19, %s106_s18 }
   0x9   :  { %p113_p3 = por %p112_p2, %p111_p1 }
   0xb   :  { %p114_p4 = pnand %p113_p3, %p107_p0 }
  0x7e   :  { %v43_v14 = vpop.permute.xlu1 %42 }
  0x7f   :  { %vm47_vm1 = vcmp.eq.s32.totalorder %v40_v15, %v43_v14 }
  0x82   :  { %v46_v19 = vpop.permute.xlu1 %45 }
  0x83   :  { %vm48_vm2 = vcmp.eq.s32.totalorder %v40_v15, %v46_v19 }
  0x8c   :  { %v17_v7 = vpop.xlane.xlu0 %16 }
  0x8d   :  { %v21_v8 = vsub.f32 %v12_v0, %v17_v7 }
  0x8f   :  { %v23_v9 = vmul.f32 1.442695, %v21_v8  ;;  %v49_v16 = vmul.f32 0.9, %v21_v8  ;;  %v51_v17 = vmul.f32 0.0032258064, %v21_v8 }
  0x90   :  { %v20_v10 = vpop.xlane.xlu0 %19 }
  0x91   :  { %98 = vpow2.f32 %v23_v9  ;;  %v22_v11 = vsub.f32 %v13_v1, %v20_v10  ;;  %v53_v23 = vsel %vm47_vm1, %v49_v16, %v51_v17 }
  0x92   :  { %v55_v25 = vsel %vm14_vm0, %v53_v23, 0.0 }
  0x93   :  { %v25_v12 = vmul.f32 1.442695, %v22_v11  ;;  %v50_v21 = vmul.f32 0.9, %v22_v11  ;;  %v52_v22 = vmul.f32 0.0032258064, %v22_v11 }
  0x95   :  { %100 = vpow2.f32 %v25_v12  ;;  %v54_v27 = vsel %vm48_vm2, %v50_v21, %v52_v22 }
  0x96   :  { %v58_v28 = vsel %vm14_vm0, %v54_v27, 0.0 }
  0x9e   :  { %v99_v18 = vpop.eup %98 }
  0x9f   :  { %v27_v20 = vsel %vm14_vm0, %v99_v18, 0.0 }
  0xa0   :  { %28 = vadd.xlane.f32.xlu0 %v27_v20 }
  0xa2   :  { %v101_v24 = vpop.eup %100 }
  0xa3   :  { %v30_v26 = vsel %vm14_vm0, %v101_v24, 0.0 }
  0xa4   :  { %56 = vadd.xlane.f32.xlu0 %v55_v25  ;;  %31 = vadd.xlane.f32.xlu1 %v30_v26 }
  0xa8   :  { %59 = vadd.xlane.f32.xlu0 %v58_v28 }
 0x129   :  { %v29_v29 = vpop.xlane.xlu0 %28 }
 0x12a   :  { %102 = vlog2.f32 %v29_v29 }
 0x12d   :  { %v32_v30 = vpop.xlane.xlu1 %31  ;;  %v57_v32 = vpop.xlane.xlu0 %56 }
 0x12e   :  { %104 = vlog2.f32 %v32_v30 }
 0x131   :  { %v60_v37 = vpop.xlane.xlu0 %59 }
 0x137   :  { %v103_v31 = vpop.eup %102 }
 0x138   :  { %v34_v33 = vmul.f32 0.6931472, %v103_v31 }
 0x13a   :  { %v61_v35 = vsub.f32 %v34_v33, %v57_v32 }
 0x13b   :  { %v105_v34 = vpop.eup %104 }
 0x13c   :  { %v36_v36 = vmul.f32 0.6931472, %v105_v34  ;;  %v64_v39 = vsel %vm63_vm3, %v61_v35, 0.0 }
 0x13e   :  { %v62_v38 = vsub.f32 %v36_v36, %v60_v37 }
 0x140   :  { %v65_v40 = vsel %vm63_vm3, %v62_v38, 0.0 }
 0x141   :  { %v66_v41 = vadd.f32 %v65_v40, %v64_v39 }
 0x143   :  { %67 = vadd.xlane.f32.xlu0 %v66_v41 }
 0x1cc   :  { %v68_v42 = vpop.xlane.xlu0 %67 }
 0x1cd   :  { %v69_v43 = vrot.slane %v68_v42, 4 }
 0x1cf   :  { %v70_v44 = vadd.f32 %v69_v43, %v68_v42 }
 0x1d1   :  { %v71_v45 = vrot.slane %v70_v44, 2 }
 0x1d3   :  { %v72_v46 = vadd.f32 %v71_v45, %v70_v44 }
 0x1d5   :  { %v73_v47 = vrot.slane %v72_v46, 1 }
 0x1d7   :  { %v74_v48 = vadd.f32 %v73_v47, %v72_v46 }
 0x1d9   :  { %92 = vpush %v74_v48 }
 0x20a   :  { %s93_s17 = spop %92 }
 0x20b   :  { %v76_v49 = vstv %s93_s17 }
 0x20c   :  { %77 = vst [vmem:[#allocation2] sm:$0x1] %v76_v49 }
 0x20d   :  { %117 = shalt.err (!%p114_p4)
}
 0x20e   :  { %87 = dma.vmem_to_hbm [thread:$0]  %s85_s1, 16, %s168_s2, [#allocation3]  }
 0x20f   :  { %126 = dma.done.wait [#allocation3], 16  }
 0x210   :  { %127 = vsyncadd [#allocation3], 4294967280 }
 0x211   :  { %91 = vsyncpa [#allocation3], 1 }

</bundles_post_ra>
